<compile_context>
chip_gen: v7x
topology: tpu7x:2x2x1
jax: 0.10.0
libtpu: 0.0.40
codegen_flags: <defaults>
</compile_context>

<pallas_src>
import jax
import jax.numpy as jnp
from jax.experimental import pallas as pl
from jax.experimental.pallas import tpu as pltpu


_TARGET_STEP_BYTES = 8 << 20  # ~8 MiB of input DMA per grid step (per-step overhead ~0.35us)


def _soft_ce_kernel(x_ref, t_ref, out_ref, m_acc, l_acc, st_acc, sxt_acc):
    """Grid step (i, j): rows tile i, class chunk j.

    Online accumulators (per row, f32):
      m_acc   running max of x
      l_acc   running sum(exp(x - m_acc))
      st_acc  running sum(t)
      sxt_acc running sum(x * t)
    Finalize at the last class chunk:
      loss = (m + log(l)) * sum_t - sum_xt
    """
    j = pl.program_id(1)

    @pl.when(j == 0)
    def _():
        m_acc[...] = jnp.full_like(m_acc, -jnp.inf)
        l_acc[...] = jnp.zeros_like(l_acc)
        st_acc[...] = jnp.zeros_like(st_acc)
        sxt_acc[...] = jnp.zeros_like(sxt_acc)

    # Cast once to f32 (no-op for f32 inputs); all math below stays f32.
    xf = x_ref[...].astype(jnp.float32)          # (tile_n, tile_c)
    tf = t_ref[...].astype(jnp.float32)          # (tile_n, tile_c)

    m_prev = m_acc[...]                                                   # (tile_n, 1)
    m_chunk = jnp.max(xf, axis=-1, keepdims=True)                         # (tile_n, 1)
    m_new = jnp.maximum(m_prev, m_chunk)                                  # (tile_n, 1)

    d = xf - m_new                      # reused by exp() and sum(x*t)    # (tile_n, tile_c)
    e = jnp.exp(d)                      # EUP                             # (tile_n, tile_c)

    sum_e = jnp.sum(e, axis=-1, keepdims=True)                            # (tile_n, 1)
    sum_t = jnp.sum(tf, axis=-1, keepdims=True)                           # (tile_n, 1)
    sum_td = jnp.sum(tf * d, axis=-1, keepdims=True)                      # (tile_n, 1)

    alpha = jnp.exp(m_prev - m_new)     # == 0 at j == 0 (m_prev = -inf)
    l_acc[...] = l_acc[...] * alpha + sum_e
    st_acc[...] = st_acc[...] + sum_t
    # sum_td + m_new*sum_t == sum(t * x) over this chunk (exact, m cancels).
    sxt_acc[...] = sxt_acc[...] + sum_td + m_new * sum_t
    m_acc[...] = m_new

    @pl.when(j == pl.num_programs(1) - 1)
    def _():
        row = (m_acc[...] + jnp.log(l_acc[...])) * st_acc[...] - sxt_acc[...]
        out_ref[...] = row                                                # (tile_n, 1) f32


def _vmem_capacity_bytes():
    """Physical VMEM per core; generation-aware with conservative fallback."""
    try:
        info = pltpu.get_tpu_info()
        cap = getattr(info, "vmem_capacity_bytes", None)
        if cap:
            return int(cap)
    except Exception:
        pass
    try:
        kind = jax.devices()[0].device_kind.lower()
        if "7" in kind:                       # v7x: 64 MiB per TensorCore
            return 64 << 20
        if any(k in kind for k in ("v4", "v5", "v6")):
            return 128 << 20                  # v4/v5e/v6e: 128 MiB
    except Exception:
        pass
    return 64 << 20  # safe default for unknown parts


def _pick_tiles(N, C, itemsize, vmem_cap, granule):
    """Choose (tile_n, tile_c) from per-step DMA bytes and true VMEM footprint."""
    # ---- class (lane) axis: full C unless it is large and 128-divisible ----
    max_tile_c = 4096
    if C <= max_tile_c or C % 128 != 0:
        tile_c = C
    else:
        tile_c = 128
        cand = (max_tile_c // 128) * 128
        while cand >= 128:
            if C % cand == 0:
                tile_c = cand
                break
            cand -= 128

    # ---- row (sublane) axis ----
    budget = (vmem_cap * 7) // 10  # headroom for compiler scratch / regalloc
    # Per-row VMEM at one grid step:
    #   2 inputs x 2 pipeline buffers + ~3 full-width f32 temporaries (+ misc).
    per_row = 2 * 2 * tile_c * itemsize + 3 * tile_c * 4 + 64
    rows_vmem = max(granule, budget // per_row)
    # Target ~8 MiB of input bytes per grid step to amortize per-step overhead.
    rows_dma = max(granule, _TARGET_STEP_BYTES // (2 * tile_c * itemsize))
    tile_n = min(rows_vmem, rows_dma)
    tile_n = max(granule, (tile_n // granule) * granule)
    # Never bigger than the (granule-padded) batch.
    n_pad_min = ((N + granule - 1) // granule) * granule
    tile_n = min(tile_n, n_pad_min)
    return tile_n, tile_c


def soft_cross_entropy(inputs, target, reduce=True, *, tile_n=None, tile_c=None):
    """Pallas implementation of softCrossEntropy.forward.

    inputs: (N, C) predictions (logits)
    target: (N, C) soft target distribution
    """
    N, C = inputs.shape
    assert target.shape == (N, C)

    out_dtype = jnp.result_type(inputs.dtype, target.dtype)
    itemsize = max(jnp.dtype(inputs.dtype).itemsize, jnp.dtype(target.dtype).itemsize)
    granule = max(8, 32 // itemsize)  # 8 rows (f32) / 16 (bf16) / 32 (int8)

    vmem_cap = _vmem_capacity_bytes()
    auto_n, auto_c = _pick_tiles(N, C, itemsize, vmem_cap, granule)
    if tile_c is None:
        tile_c = auto_c
    if tile_n is None:
        tile_n = auto_n

    assert C % tile_c == 0, "tile_c must divide C"
    assert tile_c == C or tile_c % 128 == 0, "partial class tiles must be multiples of 128"

    n_tiles = (N + tile_n - 1) // tile_n
    n_pad = n_tiles * tile_n
    assert tile_n % 8 == 0 or n_tiles == 1, "partial row tiles must be multiples of 8"
    c_tiles = C // tile_c

    # Pad the batch: zero x / zero t rows contribute exactly 0 to the loss.
    if n_pad != N:
        pad = ((0, n_pad - N), (0, 0))
        inputs_p = jnp.pad(inputs, pad)
        target_p = jnp.pad(target, pad)
    else:
        inputs_p, target_p = inputs, target

    # Scoped VMEM: double-buffered inputs + f32 temporaries + resident output
    # block + row accumulators, with headroom; raised toward physical VMEM.
    working = (2 * 2 * tile_n * tile_c * itemsize   # inputs, double buffered
               + 3 * tile_n * tile_c * 4            # f32 temporaries
               + 2 * tile_n * 4                     # output block (dbl buffered)
               + 4 * tile_n * 4)                    # accumulator scratch
    vmem_limit = int(min(vmem_cap * 17 // 20, max(48 << 20, working * 3 // 2)))

    row_loss = pl.pallas_call(
        _soft_ce_kernel,
        out_shape=jax.ShapeDtypeStruct((n_pad, 1), jnp.float32),
        grid_spec=pltpu.PrefetchScalarGridSpec(
            num_scalar_prefetch=0,
            grid=(n_tiles, c_tiles),                # class (reduction) axis last
            in_specs=[
                pl.BlockSpec((tile_n, tile_c), lambda i, j: (i, j)),
                pl.BlockSpec((tile_n, tile_c), lambda i, j: (i, j)),
            ],
            out_specs=pl.BlockSpec((tile_n, 1), lambda i, j: (i, 0)),
            scratch_shapes=[
                pltpu.VMEM((tile_n, 1), jnp.float32),   # m_acc
                pltpu.VMEM((tile_n, 1), jnp.float32),   # l_acc
                pltpu.VMEM((tile_n, 1), jnp.float32),   # st_acc
                pltpu.VMEM((tile_n, 1), jnp.float32),   # sxt_acc
            ],
        ),
        compiler_params=pltpu.CompilerParams(
            dimension_semantics=("parallel", "arbitrary"),
            vmem_limit_bytes=vmem_limit,
        ),
    )(inputs_p, target_p)

    row = row_loss[:N, 0]
    if reduce:
        return (jnp.sum(row) / jnp.float32(N)).astype(out_dtype)
    return row.astype(out_dtype)


def _reference(inputs, target, reduce=True):
    logp = jax.nn.log_softmax(inputs.astype(jnp.float32), axis=1)
    per_row = jnp.sum(-logp * target.astype(jnp.float32), axis=1)
    if reduce:
        return jnp.sum(per_row) / inputs.shape[0]
    return per_row


if __name__ == "__main__":
    key = jax.random.PRNGKey(0)
    k1, k2, k3, k4, k5, k6 = jax.random.split(key, 6)

    # Case A: small f32, reduce=True, auto tile selection (single block).
    N, C = 16, 32
    x_a = jax.random.normal(k1, (N, C), dtype=jnp.float32)
    t_a = jax.nn.softmax(jax.random.normal(k2, (N, C), dtype=jnp.float32), axis=1)
    loss_a = jax.block_until_ready(soft_cross_entropy(x_a, t_a, reduce=True))
    ref_a = _reference(x_a, t_a, reduce=True)
    assert jnp.allclose(loss_a, ref_a, atol=1e-5, rtol=1e-5)

    # Case B: awkward N (padding path), forced multi-tile grid with C-chunking
    # (online logsumexp), reduce=False.
    N, C = 13, 256
    x_b = jax.random.normal(k3, (N, C), dtype=jnp.float32)
    t_b = jax.nn.softmax(jax.random.normal(k4, (N, C), dtype=jnp.float32), axis=1)
    loss_b = jax.block_until_ready(
        soft_cross_entropy(x_b, t_b, reduce=False, tile_n=8, tile_c=128))
    ref_b = _reference(x_b, t_b, reduce=False)
    assert jnp.allclose(loss_b, ref_b, atol=1e-5, rtol=1e-5)

    # Case C: bf16 inputs (16-row granule path), reduce=True.
    N, C = 16, 64
    x_c = jax.random.normal(k5, (N, C), dtype=jnp.float32).astype(jnp.bfloat16)
    t_c = jax.nn.softmax(jax.random.normal(k6, (N, C), dtype=jnp.float32), axis=1
                         ).astype(jnp.bfloat16)
    loss_c = jax.block_until_ready(soft_cross_entropy(x_c, t_c, reduce=True))
    ref_c = _reference(x_c, t_c, reduce=True)
    assert jnp.allclose(jnp.float32(loss_c), ref_c, atol=2e-2, rtol=2e-2)

    print("KERNEL_OK")
</pallas_src>

<mosaic_0001>
module attributes {stable_mosaic.version = 11 : i64} {
  func.func @_soft_ce_kernel(%arg0: i32, %arg1: i32, %arg2: memref<16x32xf32, #tpu.memory_space<vmem>>, %arg3: memref<16x32xf32, #tpu.memory_space<vmem>>, %arg4: memref<16x1xf32, #tpu.memory_space<vmem>>, %arg5: memref<16x1xf32, #tpu.memory_space<vmem>>, %arg6: memref<16x1xf32, #tpu.memory_space<vmem>>, %arg7: memref<16x1xf32, #tpu.memory_space<vmem>>, %arg8: memref<16x1xf32, #tpu.memory_space<vmem>>) attributes {dimension_semantics = [#tpu.dimension_semantics<parallel>, #tpu.dimension_semantics<arbitrary>], iteration_bounds = array<i64: 1, 1>, scalar_prefetch = 0 : i64, scratch_operands = 4 : i64, tpu.core_type = #tpu.core_type<tc>, window_params = [{transform_indices = @transform_0, window_bounds = array<i64: 16, 32>}, {transform_indices = @transform_1, window_bounds = array<i64: 16, 32>}, {transform_indices = @transform_2, window_bounds = array<i64: 16, 1>}]} {
    %c0_i32 = arith.constant 0 : i32
    %0 = arith.cmpi eq, %arg1, %c0_i32 : i32
    %1 = arith.extui %0 : i1 to i32
    %c0_i32_0 = arith.constant 0 : i32
    %2 = arith.cmpi ne, %1, %c0_i32_0 : i32
    scf.if %2 {
      %cst_25 = arith.constant 0xFF800000 : f32
      %37 = vector.broadcast %cst_25 : f32 to vector<16x1xf32>
      %c0_26 = arith.constant 0 : index
      %c0_27 = arith.constant 0 : index
      %38 = vector.load %arg5[%c0_26, %c0_27] : memref<16x1xf32, #tpu.memory_space<vmem>>, vector<16x1xf32>
      tpu.vector_store %arg5[%c0_26, %c0_27], %37 {strides = array<i32>} : memref<16x1xf32, #tpu.memory_space<vmem>>, vector<16x1xf32>,
      %cst_28 = arith.constant 0.000000e+00 : f32
      %39 = vector.broadcast %cst_28 : f32 to vector<16x1xf32>
      %c0_29 = arith.constant 0 : index
      %c0_30 = arith.constant 0 : index
      %40 = vector.load %arg6[%c0_29, %c0_30] : memref<16x1xf32, #tpu.memory_space<vmem>>, vector<16x1xf32>
      tpu.vector_store %arg6[%c0_29, %c0_30], %39 {strides = array<i32>} : memref<16x1xf32, #tpu.memory_space<vmem>>, vector<16x1xf32>,
      %cst_31 = arith.constant 0.000000e+00 : f32
      %41 = vector.broadcast %cst_31 : f32 to vector<16x1xf32>
      %c0_32 = arith.constant 0 : index
      %c0_33 = arith.constant 0 : index
      %42 = vector.load %arg7[%c0_32, %c0_33] : memref<16x1xf32, #tpu.memory_space<vmem>>, vector<16x1xf32>
      tpu.vector_store %arg7[%c0_32, %c0_33], %41 {strides = array<i32>} : memref<16x1xf32, #tpu.memory_space<vmem>>, vector<16x1xf32>,
      %cst_34 = arith.constant 0.000000e+00 : f32
      %43 = vector.broadcast %cst_34 : f32 to vector<16x1xf32>
      %c0_35 = arith.constant 0 : index
      %c0_36 = arith.constant 0 : index
      %44 = vector.load %arg8[%c0_35, %c0_36] : memref<16x1xf32, #tpu.memory_space<vmem>>, vector<16x1xf32>
      tpu.vector_store %arg8[%c0_35, %c0_36], %43 {strides = array<i32>} : memref<16x1xf32, #tpu.memory_space<vmem>>, vector<16x1xf32>,
    } else {
    }
    %c0 = arith.constant 0 : index
    %c0_1 = arith.constant 0 : index
    %3 = vector.load %arg2[%c0, %c0_1] : memref<16x32xf32, #tpu.memory_space<vmem>>, vector<16x32xf32>
    %c0_2 = arith.constant 0 : index
    %c0_3 = arith.constant 0 : index
    %4 = vector.load %arg3[%c0_2, %c0_3] : memref<16x32xf32, #tpu.memory_space<vmem>>, vector<16x32xf32>
    %c0_4 = arith.constant 0 : index
    %c0_5 = arith.constant 0 : index
    %5 = vector.load %arg5[%c0_4, %c0_5] : memref<16x1xf32, #tpu.memory_space<vmem>>, vector<16x1xf32>
    %cst = arith.constant dense<0xFF800000> : vector<16xf32>
    %6 = vector.multi_reduction <maximumf>, %3, %cst [1] : vector<16x32xf32> to vector<16xf32>
    %7 = vector.shape_cast %6 : vector<16xf32> to vector<16x1xf32>
    %8 = arith.maximumf %5, %7 : vector<16x1xf32>
    %9 = vector.broadcast %8 : vector<16x1xf32> to vector<16x32xf32>
    %10 = arith.subf %3, %9 : vector<16x32xf32>
    %11 = math.exp %10 : vector<16x32xf32>
    %cst_6 = arith.constant dense<0.000000e+00> : vector<16xf32>
    %12 = vector.multi_reduction <add>, %11, %cst_6 [1] : vector<16x32xf32> to vector<16xf32>
    %13 = vector.shape_cast %12 : vector<16xf32> to vector<16x1xf32>
    %cst_7 = arith.constant dense<0.000000e+00> : vector<16xf32>
    %14 = vector.multi_reduction <add>, %4, %cst_7 [1] : vector<16x32xf32> to vector<16xf32>
    %15 = vector.shape_cast %14 : vector<16xf32> to vector<16x1xf32>
    %16 = arith.mulf %4, %10 : vector<16x32xf32>
    %cst_8 = arith.constant dense<0.000000e+00> : vector<16xf32>
    %17 = vector.multi_reduction <add>, %16, %cst_8 [1] : vector<16x32xf32> to vector<16xf32>
    %18 = vector.shape_cast %17 : vector<16xf32> to vector<16x1xf32>
    %19 = arith.subf %5, %8 : vector<16x1xf32>
    %20 = math.exp %19 : vector<16x1xf32>
    %c0_9 = arith.constant 0 : index
    %c0_10 = arith.constant 0 : index
    %21 = vector.load %arg6[%c0_9, %c0_10] : memref<16x1xf32, #tpu.memory_space<vmem>>, vector<16x1xf32>
    %22 = arith.mulf %21, %20 : vector<16x1xf32>
    %23 = arith.addf %22, %13 : vector<16x1xf32>
    %c0_11 = arith.constant 0 : index
    %c0_12 = arith.constant 0 : index
    %24 = vector.load %arg6[%c0_11, %c0_12] : memref<16x1xf32, #tpu.memory_space<vmem>>, vector<16x1xf32>
    tpu.vector_store %arg6[%c0_11, %c0_12], %23 {strides = array<i32>} : memref<16x1xf32, #tpu.memory_space<vmem>>, vector<16x1xf32>,
    %c0_13 = arith.constant 0 : index
    %c0_14 = arith.constant 0 : index
    %25 = vector.load %arg7[%c0_13, %c0_14] : memref<16x1xf32, #tpu.memory_space<vmem>>, vector<16x1xf32>
    %26 = arith.addf %25, %15 : vector<16x1xf32>
    %c0_15 = arith.constant 0 : index
    %c0_16 = arith.constant 0 : index
    %27 = vector.load %arg7[%c0_15, %c0_16] : memref<16x1xf32, #tpu.memory_space<vmem>>, vector<16x1xf32>
    tpu.vector_store %arg7[%c0_15, %c0_16], %26 {strides = array<i32>} : memref<16x1xf32, #tpu.memory_space<vmem>>, vector<16x1xf32>,
    %c0_17 = arith.constant 0 : index
    %c0_18 = arith.constant 0 : index
    %28 = vector.load %arg8[%c0_17, %c0_18] : memref<16x1xf32, #tpu.memory_space<vmem>>, vector<16x1xf32>
    %29 = arith.addf %28, %18 : vector<16x1xf32>
    %30 = arith.mulf %8, %15 : vector<16x1xf32>
    %31 = arith.addf %29, %30 : vector<16x1xf32>
    %c0_19 = arith.constant 0 : index
    %c0_20 = arith.constant 0 : index
    %32 = vector.load %arg8[%c0_19, %c0_20] : memref<16x1xf32, #tpu.memory_space<vmem>>, vector<16x1xf32>
    tpu.vector_store %arg8[%c0_19, %c0_20], %31 {strides = array<i32>} : memref<16x1xf32, #tpu.memory_space<vmem>>, vector<16x1xf32>,
    %c0_21 = arith.constant 0 : index
    %c0_22 = arith.constant 0 : index
    %33 = vector.load %arg5[%c0_21, %c0_22] : memref<16x1xf32, #tpu.memory_space<vmem>>, vector<16x1xf32>
    tpu.vector_store %arg5[%c0_21, %c0_22], %8 {strides = array<i32>} : memref<16x1xf32, #tpu.memory_space<vmem>>, vector<16x1xf32>,
    %c0_i32_23 = arith.constant 0 : i32
    %34 = arith.cmpi eq, %arg1, %c0_i32_23 : i32
    %35 = arith.extui %34 : i1 to i32
    %c0_i32_24 = arith.constant 0 : i32
    %36 = arith.cmpi ne, %35, %c0_i32_24 : i32
    scf.if %36 {
      %c0_25 = arith.constant 0 : index
      %c0_26 = arith.constant 0 : index
      %37 = vector.load %arg5[%c0_25, %c0_26] : memref<16x1xf32, #tpu.memory_space<vmem>>, vector<16x1xf32>
      %c0_27 = arith.constant 0 : index
      %c0_28 = arith.constant 0 : index
      %38 = vector.load %arg6[%c0_27, %c0_28] : memref<16x1xf32, #tpu.memory_space<vmem>>, vector<16x1xf32>
      %39 = math.log %38 : vector<16x1xf32>
      %40 = arith.addf %37, %39 : vector<16x1xf32>
      %c0_29 = arith.constant 0 : index
      %c0_30 = arith.constant 0 : index
      %41 = vector.load %arg7[%c0_29, %c0_30] : memref<16x1xf32, #tpu.memory_space<vmem>>, vector<16x1xf32>
      %42 = arith.mulf %40, %41 : vector<16x1xf32>
      %c0_31 = arith.constant 0 : index
      %c0_32 = arith.constant 0 : index
      %43 = vector.load %arg8[%c0_31, %c0_32] : memref<16x1xf32, #tpu.memory_space<vmem>>, vector<16x1xf32>
      %44 = arith.subf %42, %43 : vector<16x1xf32>
      %c0_33 = arith.constant 0 : index
      %c0_34 = arith.constant 0 : index
      %45 = vector.load %arg4[%c0_33, %c0_34] : memref<16x1xf32, #tpu.memory_space<vmem>>, vector<16x1xf32>
      tpu.vector_store %arg4[%c0_33, %c0_34], %44 {strides = array<i32>} : memref<16x1xf32, #tpu.memory_space<vmem>>, vector<16x1xf32>,
    } else {
    }
    return
  }
  func.func @transform_0(%arg0: i32, %arg1: i32) -> (i32, i32) {
    %c0_i32 = arith.constant 0 : i32
    return %arg0, %arg1 : i32, i32
  }
  func.func @transform_1(%arg0: i32, %arg1: i32) -> (i32, i32) {
    %c0_i32 = arith.constant 0 : i32
    return %arg0, %arg1 : i32, i32
  }
  func.func @transform_2(%arg0: i32, %arg1: i32) -> (i32, i32) {
    %c0_i32 = arith.constant 0 : i32
    %c0_i32_0 = arith.constant 0 : i32
    return %arg0, %c0_i32 : i32, i32
  }
}

</mosaic_0001>

<bundles_post_ra>
// kernel: tpu_custom_call.1
= control target key start
LH: loop header
LB: loop body
LE: loop exit
PB: predicated region body
PF: predicated region fallthrough
CT: control target
= control target key end

     0   :  { %7 = vsyncpa [#allocation7], 0  ;;  %s324_s0 = inlined_call_operand.hbm [shape: f32[16,32], index: 0, kind: input, shape index: {}]   ;;  %s325_s1 = inlined_call_operand.hbm [shape: f32[16,32], index: 1, kind: input, shape index: {}]   ;;  %s326_s2 = inlined_call_operand.vmem [shape: f32[16,1], index: 2, kind: output, shape index: {}]  }
   0x1   :  { %8 = vsyncpa [#allocation9], 0  ;;  %s234_s9 = smov [#allocation6]   ;;  %s186_s13 = scalar_lea.hbm %s324_s0, 256 }
   0x2   :  { %s14_s10 = sshll.u32 %s234_s9, 4  ;;  %p187_p0 = scmp.ne.s32.totalorder %s324_s0, %s186_s13  ;;  %s15_s10 = int_to_ptr.vmem [resolvable:$true] %s14_s10 }
   0x3   :  { %p190_p1 = scmp.lt.u32.totalorder %s186_s13, %s324_s0 }
   0x5   :  { %p192_p2 = pnand %p190_p1, %p187_p0 }
   0x7   :  { %195 = shalt.err (!%p192_p2)
}
   0x8   :  { %s196_s18 = scalar_lea.vmem %s15_s10, 256  ;;  %p201_p4 = scmp.lt.s32.totalorder %s15_s10, %s15_s10 }
   0x9   :  { %p197_p3 = scmp.ne.s32.totalorder %s15_s10, %s196_s18  ;;  %p202_p5 = scmp.lt.s32.totalorder %s196_s18, %s196_s18 }
   0xb   :  { %p203_p6 = por %p202_p5, %p201_p4 }
   0xd   :  { %p204_p7 = pnand %p203_p6, %p197_p3 }
   0xf   :  { %207 = shalt.err (!%p204_p7)
}
  0x10   :  { %s235_s19 = smov 128   ;;  %s236_s20 = smov 8  }
  0x11   :  { %20 = dma.hbm_to_vmem [thread:$0]  %s324_s0, 256, %s15_s10, [#allocation7], %s235_s19, %s235_s19, %s236_s20  }
  0x12   :  { %s237_s23 = smov [#allocation8]   ;;  %s208_s27 = scalar_lea.hbm %s325_s1, 256 }
  0x13   :  { %s26_s24 = sshll.u32 %s237_s23, 4  ;;  %p209_p8 = scmp.ne.s32.totalorder %s325_s1, %s208_s27  ;;  %s27_s24 = int_to_ptr.vmem [resolvable:$true] %s26_s24 }
  0x14   :  { %p212_p9 = scmp.lt.u32.totalorder %s208_s27, %s325_s1 }
  0x16   :  { %p214_p10 = pnand %p212_p9, %p209_p8 }
  0x18   :  { %217 = shalt.err (!%p214_p10)
}
  0x19   :  { %s218_s4 = scalar_lea.vmem %s27_s24, 256  ;;  %p223_p12 = scmp.lt.s32.totalorder %s27_s24, %s27_s24 }
  0x1a   :  { %p219_p11 = scmp.ne.s32.totalorder %s27_s24, %s218_s4  ;;  %p224_p13 = scmp.lt.s32.totalorder %s218_s4, %s218_s4 }
  0x1c   :  { %p225_p0 = por %p224_p13, %p223_p12 }
  0x1e   :  { %p226_p1 = pnand %p225_p0, %p219_p11 }
  0x20   :  { %229 = shalt.err (!%p226_p1)
}
  0x21   :  { %32 = dma.hbm_to_vmem [thread:$0]  %s325_s1, 256, %s27_s24, [#allocation9], %s235_s19, %s235_s19, %s236_s20  }
  0x22   :  { %230 = dma.done.wait [#allocation7], 256  }
  0x23   :  { %231 = vsyncadd [#allocation7], 4294967040 }
  0x24   :  { %232 = dma.done.wait [#allocation9], 256  }
  0x25   :  { %233 = vsyncadd [#allocation9], 4294967040  ;;  %vm43_vm0 = vcmask 7168   ;;  %v238_v0 = vmov -inf   ;;  %vm58_vm1 = vcmask 261120   ;;  %v52_v1 = vld [vmem:[#allocation6] sm:$0xff] }
  0x26   :  { %44 = vst.msk [vmem:[#allocation2] sm:$0xff] %vm43_vm0, %v238_v0  ;;  %45 = vst.msk [vmem:[#allocation2 + $0x8] sm:$0xff] %vm43_vm0, %v238_v0  ;;  %v53_v2 = vld [vmem:[#allocation6 + $0x8] sm:$0xff]  ;;  %v59_v3 = vsel %vm58_vm1, %v52_v1, -inf  ;;  %v239_v5 = vmov 0   ;;  %v240_v6 = vmov 0.0  }
  0x27   :  { %60 = vmax.xlane.f32.xlu0 %v59_v3  ;;  %v62_v4 = vsel %vm58_vm1, %v53_v2, -inf  ;;  %172 = vset.pattern.permute.xlu1 %v239_v5  ;;  %46 = vst.msk [vmem:[#allocation3] sm:$0xff] %vm43_vm0, %v240_v6  ;;  %47 = vst.msk [vmem:[#allocation3 + $0x8] sm:$0xff] %vm43_vm0, %v240_v6  ;;  %v54_v21 = vld [vmem:[#allocation8] sm:$0xff]  ;;  %v55_v25 = vld [vmem:[#allocation8 + $0x8] sm:$0xff] }
  0x28   :  { %173 = vset.pattern.permute.xlu0 %v239_v5  ;;  %48 = vst.msk [vmem:[#allocation4] sm:$0xff] %vm43_vm0, %v240_v6  ;;  %49 = vst.msk [vmem:[#allocation4 + $0x8] sm:$0xff] %vm43_vm0, %v240_v6  ;;  %v89_v22 = vsel %vm58_vm1, %v54_v21, 0.0  ;;  %v92_v26 = vsel %vm58_vm1, %v55_v25, 0.0 }
  0x29   :  { %50 = vst.msk [vmem:[#allocation5] sm:$0xff] %vm43_vm0, %v240_v6  ;;  %51 = vst.msk [vmem:[#allocation5 + $0x8] sm:$0xff] %vm43_vm0, %v240_v6 }
  0x2b   :  { %63 = vmax.xlane.f32.xlu0 %v62_v4 }
  0x2d   :  { %v56_v7 = vld [vmem:[#allocation2] sm:$0xff]  ;;  %v57_v10 = vld [vmem:[#allocation2 + $0x8] sm:$0xff] }
  0x2e   :  { %v109_v36 = vld [vmem:[#allocation3] sm:$0xff]  ;;  %v110_v40 = vld [vmem:[#allocation3 + $0x8] sm:$0xff] }
  0x2f   :  { %v118_v42 = vld [vmem:[#allocation4] sm:$0xff]  ;;  %v119_v48 = vld [vmem:[#allocation4 + $0x8] sm:$0xff] }
  0x30   :  { %v124_v52 = vld [vmem:[#allocation5] sm:$0xff]  ;;  %v125_v57 = vld [vmem:[#allocation5 + $0x8] sm:$0xff] }
  0xb4   :  { %v61_v8 = vpop.xlane.xlu0 %60 }
  0xb5   :  { %v290_v9 = vmax.f32 %v56_v7, %v61_v8 }
  0xb7   :  { %134 = vst.msk [vmem:[#allocation2] sm:$0xff] %vm43_vm0, %v290_v9  ;;  %69 = vperm.xlu1 %172, %v290_v9   ;;  %v103_v31 = vsub.f32 %v56_v7, %v290_v9 }
  0xb8   :  { %v64_v11 = vpop.xlane.xlu0 %63 }
  0xb9   :  { %v295_v12 = vmax.f32 %v57_v10, %v64_v11  ;;  %v105_v32 = vmul.f32 1.442695, %v103_v31 }
  0xbb   :  { %135 = vst.msk [vmem:[#allocation2 + $0x8] sm:$0xff] %vm43_vm0, %v295_v12  ;;  %74 = vperm.xlu1 %172, %v295_v12   ;;  %v104_v33 = vsub.f32 %v57_v10, %v295_v12 }
  0xbd   :  { %v107_v34 = vmul.f32 1.442695, %v104_v33 }
  0xc2   :  { %v140_v7 = vld [vmem:[#allocation2 + $0x8] sm:$0xff] }
 0x136   :  { %v70_v13 = vpop.permute.xlu1 %69 }
 0x137   :  { %v77_v14 = vsub.f32 %v52_v1, %v70_v13  ;;  %v139_v1 = vld [vmem:[#allocation2] sm:$0xff] }
 0x139   :  { %v79_v15 = vmul.f32 1.442695, %v77_v14  ;;  %v95_v27 = vmul.f32 %v77_v14, %v54_v21 }
 0x13a   :  { %v75_v16 = vpop.permute.xlu1 %74 }
 0x13b   :  { %174 = vpow2.f32 %v79_v15  ;;  %v78_v17 = vsub.f32 %v53_v2, %v75_v16  ;;  %v97_v28 = vsel %vm58_vm1, %v95_v27, 0.0 }
 0x13d   :  { %v81_v18 = vmul.f32 1.442695, %v78_v17  ;;  %v96_v29 = vmul.f32 %v78_v17, %v55_v25 }
 0x13f   :  { %176 = vpow2.f32 %v81_v18  ;;  %v100_v30 = vsel %vm58_vm1, %v96_v29, 0.0 }
 0x140   :  { %178 = vpow2.f32 %v105_v32 }
 0x141   :  { %180 = vpow2.f32 %v107_v34 }
 0x145   :  { %v175_v19 = vpop.eup %174 }
 0x146   :  { %v83_v20 = vsel %vm58_vm1, %v175_v19, 0.0 }
 0x147   :  { %84 = vadd.xlane.f32.xlu0 %v83_v20 }
 0x149   :  { %v177_v23 = vpop.eup %176 }
 0x14a   :  { %v86_v24 = vsel %vm58_vm1, %v177_v23, 0.0  ;;  %v179_v35 = vpop.eup %178 }
 0x14b   :  { %90 = vadd.xlane.f32.xlu0 %v89_v22  ;;  %87 = vadd.xlane.f32.xlu1 %v86_v24  ;;  %v111_v37 = vmul.f32 %v179_v35, %v109_v36  ;;  %v181_v38 = vpop.eup %180 }
 0x14c   :  { %v112_v43 = vmul.f32 %v181_v38, %v110_v40 }
 0x14f   :  { %93 = vadd.xlane.f32.xlu0 %v92_v26 }
 0x153   :  { %98 = vadd.xlane.f32.xlu0 %v97_v28 }
 0x157   :  { %101 = vadd.xlane.f32.xlu0 %v100_v30 }
 0x1d4   :  { %v85_v39 = vpop.xlane.xlu0 %84 }
 0x1d5   :  { %v113_v41 = vadd.f32 %v111_v37, %v85_v39 }
 0x1d7   :  { %116 = vst.msk [vmem:[#allocation3] sm:$0xff] %vm43_vm0, %v113_v41 }
 0x1d8   :  { %v91_v44 = vpop.xlane.xlu0 %90  ;;  %v88_v45 = vpop.xlane.xlu1 %87 }
 0x1d9   :  { %v120_v46 = vadd.f32 %v118_v42, %v91_v44  ;;  %v114_v47 = vadd.f32 %v112_v43, %v88_v45  ;;  %v128_v54 = vmul.f32 %v91_v44, %v290_v9 }
 0x1db   :  { %122 = vst.msk [vmem:[#allocation4] sm:$0xff] %vm43_vm0, %v120_v46  ;;  %117 = vst.msk [vmem:[#allocation3 + $0x8] sm:$0xff] %vm43_vm0, %v114_v47 }
 0x1dc   :  { %v94_v49 = vpop.xlane.xlu0 %93 }
 0x1dd   :  { %v121_v50 = vadd.f32 %v119_v48, %v94_v49  ;;  %v129_v60 = vmul.f32 %v94_v49, %v295_v12 }
 0x1de   :  { %v141_v51 = vld [vmem:[#allocation3] sm:$0xff] }
 0x1df   :  { %182 = vlog2.f32 %v141_v51  ;;  %123 = vst.msk [vmem:[#allocation4 + $0x8] sm:$0xff] %vm43_vm0, %v121_v50 }
 0x1e0   :  { %v99_v53 = vpop.xlane.xlu0 %98 }
 0x1e1   :  { %v126_v55 = vadd.f32 %v124_v52, %v99_v53 }
 0x1e2   :  { %v142_v56 = vld [vmem:[#allocation3 + $0x8] sm:$0xff]  ;;  %v149_v4 = vld [vmem:[#allocation4] sm:$0xff] }
 0x1e3   :  { %184 = vlog2.f32 %v142_v56  ;;  %v130_v58 = vadd.f32 %v128_v54, %v126_v55 }
 0x1e4   :  { %v102_v59 = vpop.xlane.xlu0 %101 }
 0x1e5   :  { %132 = vst.msk [vmem:[#allocation5] sm:$0xff] %vm43_vm0, %v130_v58  ;;  %v127_v61 = vadd.f32 %v125_v57, %v102_v59 }
 0x1e6   :  { %v150_v11 = vld [vmem:[#allocation4 + $0x8] sm:$0xff] }
 0x1e7   :  { %v131_v62 = vadd.f32 %v129_v60, %v127_v61 }
 0x1e9   :  { %v183_v63 = vpop.eup %182  ;;  %133 = vst.msk [vmem:[#allocation5 + $0x8] sm:$0xff] %vm43_vm0, %v131_v62 }
 0x1ea   :  { %v144_v0 = vmul.f32 0.6931472, %v183_v63 }
 0x1ec   :  { %v147_v2 = vadd.f32 %v144_v0, %v139_v1  ;;  %v153_v8 = vld [vmem:[#allocation5] sm:$0xff] }
 0x1ed   :  { %v185_v3 = vpop.eup %184 }
 0x1ee   :  { %v151_v5 = vmul.f32 %v149_v4, %v147_v2  ;;  %v146_v6 = vmul.f32 0.6931472, %v185_v3 }
 0x1f0   :  { %v148_v9 = vadd.f32 %v146_v6, %v140_v7  ;;  %v155_v10 = vsub.f32 %v151_v5, %v153_v8  ;;  %v154_v13 = vld [vmem:[#allocation5 + $0x8] sm:$0xff] }
 0x1f2   :  { %v152_v12 = vmul.f32 %v150_v11, %v148_v9  ;;  %157 = vst.msk [vmem:[%s326_s2] sm:$0xff] %vm43_vm0, %v155_v10 }
 0x1f4   :  { %v156_v14 = vsub.f32 %v152_v12, %v154_v13 }
 0x1f6   :  { %158 = vst.msk [vmem:[%s326_s2 + $0x8] sm:$0xff] %vm43_vm0, %v156_v14 }
 0x1f7   :  { %163 = vsyncpa [#allocation7], 1 }
 0x1f8   :  { %164 = vsyncpa [#allocation9], 1 }

</bundles_post_ra>
